<compile_context>
chip_gen: v6e
topology: v6e:2x2x1
jax: 0.10.0
libtpu: 0.0.40
codegen_flags: <defaults>
</compile_context>

<pallas_src>
import functools

import jax
import jax.numpy as jnp
from jax.experimental import pallas as pl
from jax.experimental.pallas import tpu as pltpu

HIDDEN = 64


def actor_kernel(x_ref, w1_ref, b1_ref, w2_ref, b2_ref, w3_ref, b3_ref,
                 mean_ref):
    x = x_ref[...]                                             # (TB, n_states)

    # fc1 + relu
    h1 = jnp.dot(x, w1_ref[...], preferred_element_type=jnp.float32)
    h1 = jnp.maximum(h1 + b1_ref[...], 0.0)                    # (TB, 64)

    # fc2 + relu
    h2 = jnp.dot(h1, w2_ref[...], preferred_element_type=jnp.float32)
    h2 = jnp.maximum(h2 + b2_ref[...], 0.0)                    # (TB, 64)

    # fc3 duplicated into a 2-wide head: both columns hold the same fc3 value.
    z = jnp.dot(h2, w3_ref[...], preferred_element_type=jnp.float32)
    z = z + b3_ref[...]                                        # (TB, 2)

    # column 0 -> relu head (linear_mean), column 1 -> tanh head (angular_mean)
    col = jax.lax.broadcasted_iota(jnp.int32, z.shape, dimension=1)
    mean_ref[...] = jnp.where(col == 0, jnp.maximum(z, 0.0), jnp.tanh(z))


def _round_up(n, m):
    return ((n + m - 1) // m) * m


@functools.partial(jax.jit, static_argnames=("block_b",))
def actor_forward(x, params, block_b=512):
    """x: (B, n_states) f32. Returns (mean (B, 2), std (B, 2))."""
    w1, b1, w2, b2, w3, b3, log_std = params
    B, n_states = x.shape
    n_actions = log_std.shape[-1]

    # Duplicate fc3 so the head matmul is (64, 2) instead of (64, 1) + concat.
    w3d = jnp.concatenate([w3, w3], axis=1)                    # (64, 2)
    b3d = jnp.concatenate([b3, b3], axis=1)                    # (1, 2)

    # Batch tile: multiple of 8 sublanes, capped at block_b, pad B to fit.
    tb = min(block_b, _round_up(B, 8))
    tb = _round_up(tb, 8)
    b_pad = _round_up(B, tb)
    xp = x if b_pad == B else jnp.pad(x, ((0, b_pad - B), (0, 0)))
    grid = (pl.cdiv(b_pad, tb),)

    def resident(shape):
        # full-array block, constant index -> stays in VMEM across grid steps
        return pl.BlockSpec(shape, lambda i: (0,) * len(shape))

    mean = pl.pallas_call(
        actor_kernel,
        out_shape=jax.ShapeDtypeStruct((b_pad, 2), jnp.float32),
        grid=grid,
        in_specs=[
            pl.BlockSpec((tb, n_states), lambda i: (i, 0)),    # x tiles
            resident(w1.shape), resident(b1.shape),
            resident(w2.shape), resident(b2.shape),
            resident(w3d.shape), resident(b3d.shape),
        ],
        out_specs=pl.BlockSpec((tb, 2), lambda i: (i, 0)),
        compiler_params=pltpu.CompilerParams(
            dimension_semantics=("parallel",)),
    )(xp, w1, b1, w2, b2, w3d, b3d)

    mean = mean[:B]
    # std is independent of x: compute once in the wrapper (no kernel output).
    std = jnp.broadcast_to(jnp.exp(log_std.reshape(1, n_actions)), mean.shape)
    return mean, std


def init_params(key, n_states, n_actions):
    """Deterministic synthetic init matching nn.Linear shapes.

    Weights are returned already transposed to (in, out). Biases / log_std
    are kept 2-D (1, out) so they broadcast cleanly.
    """
    ks = jax.random.split(key, 6)

    def lin(kw, kb, fan_in, fan_out):
        bound = 1.0 / jnp.sqrt(fan_in)
        w = jax.random.uniform(kw, (fan_in, fan_out), jnp.float32, -bound, bound)
        b = jax.random.uniform(kb, (1, fan_out), jnp.float32, -bound, bound)
        return w, b

    w1, b1 = lin(ks[0], ks[1], n_states, HIDDEN)
    w2, b2 = lin(ks[2], ks[3], HIDDEN, HIDDEN)
    w3, b3 = lin(ks[4], ks[5], HIDDEN, 1)
    log_std = jnp.full((1, n_actions), -2.0, dtype=jnp.float32)
    return (w1, b1, w2, b2, w3, b3, log_std)


def reference_forward(x, params):
    """Pure-JAX reference mirroring the PyTorch module."""
    w1, b1, w2, b2, w3, b3, log_std = params
    h1 = jax.nn.relu(x @ w1 + b1)
    h2 = jax.nn.relu(h1 @ w2 + b2)
    z = h2 @ w3 + b3
    mean = jnp.concatenate([jax.nn.relu(z), jnp.tanh(z)], axis=-1)
    std = jnp.broadcast_to(jnp.exp(log_std), mean.shape)
    return mean, std


if __name__ == "__main__":
    n_states, n_actions, batch = 16, 2, 8
    key = jax.random.PRNGKey(0)
    kx, kp, kx2 = jax.random.split(key, 3)
    params = init_params(kp, n_states, n_actions)

    # Small batch (single tile).
    x = jax.random.normal(kx, (batch, n_states), dtype=jnp.float32)
    mean, std = actor_forward(x, params)
    jax.block_until_ready((mean, std))
    ref_mean, ref_std = reference_forward(x, params)
    assert mean.shape == (batch, 2) and std.shape == (batch, 2)
    assert jnp.allclose(mean, ref_mean, atol=1e-5, rtol=1e-5)
    assert jnp.allclose(std, ref_std, atol=1e-6, rtol=1e-6)

    # Larger, non-tile-aligned batch (exercises grid + padding + slicing).
    big_b = 1000
    x2 = jax.random.normal(kx2, (big_b, n_states), dtype=jnp.float32)
    mean2, std2 = actor_forward(x2, params)
    jax.block_until_ready((mean2, std2))
    ref_mean2, ref_std2 = reference_forward(x2, params)
    assert mean2.shape == (big_b, 2) and std2.shape == (big_b, 2)
    assert jnp.allclose(mean2, ref_mean2, atol=1e-5, rtol=1e-5)
    assert jnp.allclose(std2, ref_std2, atol=1e-6, rtol=1e-6)

    print("KERNEL_OK")
</pallas_src>

<mosaic_0001>
module attributes {stable_mosaic.version = 11 : i64} {
  func.func @actor_kernel(%arg0: i32, %arg1: memref<8x16xf32, #tpu.memory_space<vmem>>, %arg2: memref<16x64xf32, #tpu.memory_space<vmem>>, %arg3: memref<1x64xf32, #tpu.memory_space<vmem>>, %arg4: memref<64x64xf32, #tpu.memory_space<vmem>>, %arg5: memref<1x64xf32, #tpu.memory_space<vmem>>, %arg6: memref<64x2xf32, #tpu.memory_space<vmem>>, %arg7: memref<1x2xf32, #tpu.memory_space<vmem>>, %arg8: memref<8x2xf32, #tpu.memory_space<vmem>>) attributes {dimension_semantics = [#tpu.dimension_semantics<parallel>], iteration_bounds = array<i64: 1>, scalar_prefetch = 0 : i64, scratch_operands = 0 : i64, tpu.core_type = #tpu.core_type<tc>, window_params = [{transform_indices = @transform_0, window_bounds = array<i64: 8, 16>}, {pipeline_mode = #tpu.pipeline_mode<synchronous>, transform_indices = @transform_1, window_bounds = array<i64: 16, 64>}, {pipeline_mode = #tpu.pipeline_mode<synchronous>, transform_indices = @transform_2, window_bounds = array<i64: 1, 64>}, {pipeline_mode = #tpu.pipeline_mode<synchronous>, transform_indices = @transform_3, window_bounds = array<i64: 64, 64>}, {pipeline_mode = #tpu.pipeline_mode<synchronous>, transform_indices = @transform_4, window_bounds = array<i64: 1, 64>}, {pipeline_mode = #tpu.pipeline_mode<synchronous>, transform_indices = @transform_5, window_bounds = array<i64: 64, 2>}, {pipeline_mode = #tpu.pipeline_mode<synchronous>, transform_indices = @transform_6, window_bounds = array<i64: 1, 2>}, {transform_indices = @transform_7, window_bounds = array<i64: 8, 2>}]} {
    %c0 = arith.constant 0 : index
    %c0_0 = arith.constant 0 : index
    %0 = vector.load %arg1[%c0, %c0_0] : memref<8x16xf32, #tpu.memory_space<vmem>>, vector<8x16xf32>
    %c0_1 = arith.constant 0 : index
    %c0_2 = arith.constant 0 : index
    %1 = vector.load %arg2[%c0_1, %c0_2] : memref<16x64xf32, #tpu.memory_space<vmem>>, vector<16x64xf32>
    %cst = arith.constant dense<0.000000e+00> : vector<8x64xf32>
    %2 = tpu.matmul %0, %1, %cst {dimension_numbers = #tpu.dot_dimension_numbers<[1], [0], [0], [1], [0, 0, 1, 1], [], []>} : vector<8x16xf32>, vector<16x64xf32>, vector<8x64xf32> -> vector<8x64xf32>
    %c0_3 = arith.constant 0 : index
    %c0_4 = arith.constant 0 : index
    %3 = vector.load %arg3[%c0_3, %c0_4] : memref<1x64xf32, #tpu.memory_space<vmem>>, vector<1x64xf32>
    %4 = vector.broadcast %3 : vector<1x64xf32> to vector<8x64xf32>
    %5 = arith.addf %2, %4 : vector<8x64xf32>
    %cst_5 = arith.constant 0.000000e+00 : f32
    %6 = vector.broadcast %cst_5 : f32 to vector<8x64xf32>
    %7 = arith.maximumf %5, %6 : vector<8x64xf32>
    %c0_6 = arith.constant 0 : index
    %c0_7 = arith.constant 0 : index
    %8 = vector.load %arg4[%c0_6, %c0_7] : memref<64x64xf32, #tpu.memory_space<vmem>>, vector<64x64xf32>
    %cst_8 = arith.constant dense<0.000000e+00> : vector<8x64xf32>
    %9 = tpu.matmul %7, %8, %cst_8 {dimension_numbers = #tpu.dot_dimension_numbers<[1], [0], [0], [1], [0, 0, 1, 1], [], []>} : vector<8x64xf32>, vector<64x64xf32>, vector<8x64xf32> -> vector<8x64xf32>
    %c0_9 = arith.constant 0 : index
    %c0_10 = arith.constant 0 : index
    %10 = vector.load %arg5[%c0_9, %c0_10] : memref<1x64xf32, #tpu.memory_space<vmem>>, vector<1x64xf32>
    %11 = vector.broadcast %10 : vector<1x64xf32> to vector<8x64xf32>
    %12 = arith.addf %9, %11 : vector<8x64xf32>
    %cst_11 = arith.constant 0.000000e+00 : f32
    %13 = vector.broadcast %cst_11 : f32 to vector<8x64xf32>
    %14 = arith.maximumf %12, %13 : vector<8x64xf32>
    %c0_12 = arith.constant 0 : index
    %c0_13 = arith.constant 0 : index
    %15 = vector.load %arg6[%c0_12, %c0_13] : memref<64x2xf32, #tpu.memory_space<vmem>>, vector<64x2xf32>
    %cst_14 = arith.constant dense<0.000000e+00> : vector<8x2xf32>
    %16 = tpu.matmul %14, %15, %cst_14 {dimension_numbers = #tpu.dot_dimension_numbers<[1], [0], [0], [1], [0, 0, 1, 1], [], []>} : vector<8x64xf32>, vector<64x2xf32>, vector<8x2xf32> -> vector<8x2xf32>
    %c0_15 = arith.constant 0 : index
    %c0_16 = arith.constant 0 : index
    %17 = vector.load %arg7[%c0_15, %c0_16] : memref<1x2xf32, #tpu.memory_space<vmem>>, vector<1x2xf32>
    %18 = vector.broadcast %17 : vector<1x2xf32> to vector<8x2xf32>
    %19 = arith.addf %16, %18 : vector<8x2xf32>
    %20 = tpu.iota {dimensions = array<i32: 1>} : vector<8x2xi32>
    %c0_i32 = arith.constant 0 : i32
    %21 = vector.broadcast %c0_i32 : i32 to vector<8x2xi32>
    %22 = arith.cmpi eq, %20, %21 : vector<8x2xi32>
    %cst_17 = arith.constant 0.000000e+00 : f32
    %23 = vector.broadcast %cst_17 : f32 to vector<8x2xf32>
    %24 = arith.maximumf %19, %23 : vector<8x2xf32>
    %25 = math.tanh %19 : vector<8x2xf32>
    %26 = arith.select %22, %24, %25 : vector<8x2xi1>, vector<8x2xf32>
    %c0_18 = arith.constant 0 : index
    %c0_19 = arith.constant 0 : index
    %27 = vector.load %arg8[%c0_18, %c0_19] : memref<8x2xf32, #tpu.memory_space<vmem>>, vector<8x2xf32>
    tpu.vector_store %arg8[%c0_18, %c0_19], %26 {strides = array<i32>} : memref<8x2xf32, #tpu.memory_space<vmem>>, vector<8x2xf32>,
    return
  }
  func.func @transform_0(%arg0: i32) -> (i32, i32) {
    %c0_i32 = arith.constant 0 : i32
    %c0_i32_0 = arith.constant 0 : i32
    return %arg0, %c0_i32 : i32, i32
  }
  func.func @transform_1(%arg0: i32) -> (i32, i32) {
    %c0_i32 = arith.constant 0 : i32
    %c0_i32_0 = arith.constant 0 : i32
    %c0_i32_1 = arith.constant 0 : i32
    return %c0_i32, %c0_i32_0 : i32, i32
  }
  func.func @transform_2(%arg0: i32) -> (i32, i32) {
    %c0_i32 = arith.constant 0 : i32
    %c0_i32_0 = arith.constant 0 : i32
    %c0_i32_1 = arith.constant 0 : i32
    return %c0_i32, %c0_i32_0 : i32, i32
  }
  func.func @transform_3(%arg0: i32) -> (i32, i32) {
    %c0_i32 = arith.constant 0 : i32
    %c0_i32_0 = arith.constant 0 : i32
    %c0_i32_1 = arith.constant 0 : i32
    return %c0_i32, %c0_i32_0 : i32, i32
  }
  func.func @transform_4(%arg0: i32) -> (i32, i32) {
    %c0_i32 = arith.constant 0 : i32
    %c0_i32_0 = arith.constant 0 : i32
    %c0_i32_1 = arith.constant 0 : i32
    return %c0_i32, %c0_i32_0 : i32, i32
  }
  func.func @transform_5(%arg0: i32) -> (i32, i32) {
    %c0_i32 = arith.constant 0 : i32
    %c0_i32_0 = arith.constant 0 : i32
    %c0_i32_1 = arith.constant 0 : i32
    return %c0_i32, %c0_i32_0 : i32, i32
  }
  func.func @transform_6(%arg0: i32) -> (i32, i32) {
    %c0_i32 = arith.constant 0 : i32
    %c0_i32_0 = arith.constant 0 : i32
    %c0_i32_1 = arith.constant 0 : i32
    return %c0_i32, %c0_i32_0 : i32, i32
  }
  func.func @transform_7(%arg0: i32) -> (i32, i32) {
    %c0_i32 = arith.constant 0 : i32
    %c0_i32_0 = arith.constant 0 : i32
    return %arg0, %c0_i32 : i32, i32
  }
}

</mosaic_0001>

<bundles_post_ra>
// kernel: actor_forward.1
= control target key start
LH: loop header
LB: loop body
LE: loop exit
PB: predicated region body
PF: predicated region fallthrough
CT: control target
= control target key end

     0   :  { %12 = vsyncpa [#allocation3], 0  ;;  %s621_s0 = inlined_call_operand.hbm [shape: f32[8,16], index: 0, kind: input, shape index: {}]   ;;  %s622_s1 = inlined_call_operand.vmem [shape: f32[16,64], index: 1, kind: input, shape index: {}]   ;;  %s623_s2 = inlined_call_operand.hbm [shape: f32[1,64], index: 2, kind: input, shape index: {}]   ;;  %s624_s3 = inlined_call_operand.vmem [shape: f32[64,64], index: 3, kind: input, shape index: {}]   ;;  %s625_s4 = inlined_call_operand.hbm [shape: f32[1,64], index: 4, kind: input, shape index: {}]   ;;  %s626_s5 = inlined_call_operand.vmem [shape: f32[64,2], index: 5, kind: input, shape index: {}]   ;;  %s627_s6 = inlined_call_operand.vmem [shape: f32[1,2], index: 6, kind: input, shape index: {}]   ;;  %s628_s7 = inlined_call_operand.vmem [shape: f32[8,2], index: 7, kind: output, shape index: {}]  }
   0x1   :  { %13 = vsyncpa [#allocation5], 0  ;;  %s481_s24 = smov [#allocation4]   ;;  %s482_s26 = smov [#allocation2]  }
   0x2   :  { %s32_s25 = sshll.u32 %s481_s24, 4  ;;  %s20_s27 = sshll.u32 %s482_s26, 4  ;;  %s33_s25 = int_to_ptr.vmem [resolvable:$true] %s32_s25  ;;  %s21_s27 = int_to_ptr.vmem [resolvable:$true] %s20_s27 }
   0x3   :  { %s425_s28 = scalar_lea.vmem %s33_s25, 16  ;;  %s429_s29 = scalar_lea.vmem %s33_s25, 32 }
   0x4   :  { %p426_p0 = scmp.ne.s32.totalorder %s33_s25, %s425_s28  ;;  %p430_p1 = scmp.lt.s32.totalorder %s33_s25, %s33_s25 }
   0x5   :  { %p431_p2 = scmp.lt.s32.totalorder %s429_s29, %s425_s28 }
   0x7   :  { %p432_p3 = por %p431_p2, %p430_p1 }
   0x9   :  { %p433_p4 = pnand %p432_p3, %p426_p0 }
   0xb   :  { %436 = shalt.err (!%p433_p4)
}
   0xc   :  { %35 = dma.hbm_to_vmem [thread:$0]  %s623_s2, 16, %s33_s25, [#allocation5]  }
   0xd   :  { %s445_s9 = scalar_lea.vmem %s21_s27, 128  ;;  %p450_p6 = scmp.lt.s32.totalorder %s21_s27, %s21_s27 }
   0xe   :  { %p446_p5 = scmp.ne.s32.totalorder %s21_s27, %s445_s9  ;;  %p451_p7 = scmp.lt.s32.totalorder %s445_s9, %s445_s9 }
  0x10   :  { %p452_p8 = por %p451_p7, %p450_p6 }
  0x12   :  { %p453_p9 = pnand %p452_p8, %p446_p5 }
  0x14   :  { %456 = shalt.err (!%p453_p9)
}
  0x15   :  { %23 = dma.hbm_to_vmem [thread:$0]  %s621_s0, 128, %s21_s27, [#allocation3]  }
  0x16   :  { %s483_s12 = smov [#allocation6]  }
  0x17   :  { %s44_s13 = sshll.u32 %s483_s12, 4  ;;  %s45_s13 = int_to_ptr.vmem [resolvable:$true] %s44_s13 }
  0x18   :  { %s465_s14 = scalar_lea.vmem %s45_s13, 16  ;;  %s469_s15 = scalar_lea.vmem %s45_s13, 32 }
  0x19   :  { %p466_p10 = scmp.ne.s32.totalorder %s45_s13, %s465_s14  ;;  %p470_p11 = scmp.lt.s32.totalorder %s45_s13, %s45_s13 }
  0x1a   :  { %p471_p12 = scmp.lt.s32.totalorder %s469_s15, %s465_s14 }
  0x1c   :  { %p472_p13 = por %p471_p12, %p470_p11 }
  0x1e   :  { %p473_p0 = pnand %p472_p13, %p466_p10 }
  0x20   :  { %476 = shalt.err (!%p473_p0)
}
  0x21   :  { %47 = dma.hbm_to_vmem [thread:$0]  %s625_s4, 16, %s45_s13, [#allocation5]  }
  0x22   :  { %477 = dma.done.wait [#allocation3], 128  }
  0x23   :  { %478 = vsyncadd [#allocation3], 4294967168 }
  0x24   :  { %479 = dma.done.wait [#allocation5], 32  }
  0x25   :  { %480 = vsyncadd [#allocation5], 4294967264  ;;  %v484_v0 = vmov 0.0   ;;  %vm485_vm0 = vmmov 0   ;;  %v63_v1 = vld [vmem:[%s622_s1 + $0x8] sm:$0xff]  ;;  %v62_v2 = vld [vmem:[%s622_s1] sm:$0xff]  ;;  %v324_v34 = vlaneseq }
  0x26   :  { %365 = vmatprep.subr.mxu0 %v484_v0  ;;  %369 = vmatprep.mubr.msk.f32.mxu0 %vm485_vm0, %v484_v0  ;;  %v61_v3 = vld [vmem:[#allocation2] sm:$0xff]  ;;  %vm71_vm1 = vcmask 130048   ;;  %v153_v4 = vld [vmem:[%s624_s3 + $0x38] sm:$0xff]  ;;  %v152_v5 = vld [vmem:[%s624_s3 + $0x30] sm:$0xff]  ;;  %vm161_vm2 = vcmask 523264   ;;  %vm330_vm4 = vcmask 15360  }
  0x27   :  { %372 = vmatprep.subr.mxu1 %v484_v0  ;;  %388 = vmatprep.mubr.msk.f32.mxu1 %vm485_vm0, %v484_v0  ;;  %v151_v6 = vld [vmem:[%s624_s3 + $0x28] sm:$0xff]  ;;  %v150_v7 = vld [vmem:[%s624_s3 + $0x20] sm:$0xff]  ;;  %v149_v8 = vld [vmem:[%s624_s3 + $0x18] sm:$0xff]  ;;  %v325_v35 = vand.u32 127, %v324_v34 }
  0x28   :  { %366 = vmatpush3.msra.mxu0 %v63_v1  ;;  %373 = vmatpush3.msra.mxu1 %v153_v4  ;;  %v148_v9 = vld [vmem:[%s624_s3 + $0x10] sm:$0xff]  ;;  %v147_v10 = vld [vmem:[%s624_s3 + $0x8] sm:$0xff]  ;;  %v146_v11 = vld [vmem:[%s624_s3] sm:$0xff] }
  0x29   :  { %367 = vmatprep.subr.mxu0 %v484_v0  ;;  %374 = vmatprep.subr.mxu1 %v484_v0  ;;  %v243_v12 = vld [vmem:[%s626_s5 + $0x38] sm:$0xff]  ;;  %v242_v13 = vld [vmem:[%s626_s5 + $0x30] sm:$0xff]  ;;  %v241_v14 = vld [vmem:[%s626_s5 + $0x28] sm:$0xff]  ;;  %vm326_vm3 = vcmp.eq.s32.totalorder %v325_v35, 0 }
  0x2a   :  { %368 = vmatpush3.msra.mxu0 %v62_v2  ;;  %375 = vmatpush3.msra.mxu1 %v152_v5  ;;  %v240_v15 = vld [vmem:[%s626_s5 + $0x20] sm:$0xff]  ;;  %v239_v16 = vld [vmem:[%s626_s5 + $0x18] sm:$0xff]  ;;  %v338_v17 = vld [vmem:[#allocation4] ss:$0 sm:$0xff] }
  0x2b   :  { %370 = vmatmul.mubr.msk.f32.vlgmr.msra.gmra.mxu0 %vm71_vm1, %v61_v3  ;;  %376 = vmatprep.subr.mxu1 %v484_v0  ;;  %v238_v22 = vld [vmem:[%s626_s5 + $0x10] sm:$0xff]  ;;  %v237_v23 = vld [vmem:[%s626_s5 + $0x8] sm:$0xff]  ;;  %v236_v24 = vld [vmem:[%s626_s5] sm:$0xff] }
  0x2c   :  { %391 = vmatprep.subr.mxu0 %v484_v0  ;;  %377 = vmatpush3.msra.mxu1 %v151_v6  ;;  %v340_v25 = vld [vmem:[#allocation6] ss:$0 sm:$0xff]  ;;  %v342_v30 = vld [vmem:[%s627_s6] ss:$0 sm:$0xff] }
  0x2d   :  { %407 = vmatprep.mubr.msk.f32.mxu0 %vm485_vm0, %v484_v0  ;;  %378 = vmatprep.subr.mxu1 %v484_v0 }
  0x2e   :  { %379 = vmatpush3.msra.mxu1 %v150_v7  ;;  %392 = vmatpush3.msra.mxu0 %v243_v12 }
  0x2f   :  { %380 = vmatprep.subr.mxu1 %v484_v0  ;;  %393 = vmatprep.subr.mxu0 %v484_v0 }
  0x30   :  { %381 = vmatpush3.msra.mxu1 %v149_v8  ;;  %394 = vmatpush3.msra.mxu0 %v242_v13 }
  0x31   :  { %382 = vmatprep.subr.mxu1 %v484_v0  ;;  %395 = vmatprep.subr.mxu0 %v484_v0 }
  0x32   :  { %383 = vmatpush3.msra.mxu1 %v148_v9  ;;  %396 = vmatpush3.msra.mxu0 %v241_v14 }
  0x33   :  { %384 = vmatprep.subr.mxu1 %v484_v0  ;;  %397 = vmatprep.subr.mxu0 %v484_v0 }
  0x34   :  { %385 = vmatpush3.msra.mxu1 %v147_v10  ;;  %398 = vmatpush3.msra.mxu0 %v240_v15 }
  0x35   :  { %386 = vmatprep.subr.mxu1 %v484_v0  ;;  %399 = vmatprep.subr.mxu0 %v484_v0 }
  0x36   :  { %387 = vmatpush3.msra.mxu1 %v146_v11  ;;  %400 = vmatpush3.msra.mxu0 %v239_v16 }
  0x37   :  { %401 = vmatprep.subr.mxu0 %v484_v0 }
  0x38   :  { %402 = vmatpush3.msra.mxu0 %v238_v22 }
  0x39   :  { %403 = vmatprep.subr.mxu0 %v484_v0 }
  0x3a   :  { %404 = vmatpush3.msra.mxu0 %v237_v23 }
  0x3b   :  { %405 = vmatprep.subr.mxu0 %v484_v0 }
  0x3c   :  { %406 = vmatpush3.msra.mxu0 %v236_v24 }
  0xeb   :  { %v141_v18 = vpop.f32.mrf.mxu0 }
  0xec   :  { %v142_v19 = vadd.f32 %v338_v17, %v141_v18 }
  0xed   :  { %v371_v20 = vpop.f32.mrf.mxu0 }
  0xee   :  { %v145_v21 = vmax.f32 %v142_v19, 0.0 }
  0xf0   :  { %389 = vmatmul.mubr.msk.f32.vlgmr.msra.gmra.mxu1 %vm161_vm2, %v145_v21 }
 0x1b0   :  { %v231_v26 = vpop.f32.mrf.mxu1 }
 0x1b1   :  { %v232_v27 = vadd.f32 %v340_v25, %v231_v26 }
 0x1b2   :  { %v390_v28 = vpop.f32.mrf.mxu1 }
 0x1b3   :  { %v235_v29 = vmax.f32 %v232_v27, 0.0 }
 0x1b5   :  { %408 = vmatmul.mubr.msk.f32.vlgmr.msra.gmra.mxu0 %vm161_vm2, %v235_v29 }
 0x275   :  { %v320_v31 = vpop.f32.mrf.mxu0 }
 0x276   :  { %v321_v32 = vadd.f32 %v342_v30, %v320_v31 }
 0x277   :  { %v409_v33 = vpop.f32.mrf.mxu0 }
 0x278   :  { %415 = vtanh.f32 %v321_v32  ;;  %v327_v36 = vmax.f32 %v321_v32, 0.0 }
 0x285   :  { %v416_v37 = vpop.eup %415 }
 0x286   :  { %v329_v38 = vsel %vm326_vm3, %v327_v36, %v416_v37 }
 0x287   :  { %331 = vst.msk [vmem:[%s628_s7] sm:$0xff] %vm330_vm4, %v329_v38 }
 0x288   :  { %336 = vsyncpa [#allocation3], 1 }
 0x289   :  { %337 = vsyncpa [#allocation5], 1 }

</bundles_post_ra>
